<compile_context>
chip_gen: v7x
topology: tpu7x:2x2x1
jax: 0.10.0
libtpu: 0.0.40
codegen_flags: <defaults>
</compile_context>

<pallas_src>
import functools

import jax
import jax.numpy as jnp
from jax.experimental import pallas as pl
from jax.experimental.pallas import tpu as pltpu

_LANES = 128
_TARGET_BUF_BYTES = 4 << 20   # per pipeline input buffer
_MAX_TILE_ROWS = 4096


def _sublane(dtype) -> int:
    itemsize = jnp.dtype(dtype).itemsize
    return {4: 8, 2: 16, 1: 32}.get(itemsize, 8)


def _choose_tile_rows(rows: int, row_bytes: int, sublane: int) -> int:
    """Largest sublane-aligned row tile within the VMEM byte budget."""
    if rows <= sublane:
        return rows                      # full-dim block (always legal)
    tile = max(1, _TARGET_BUF_BYTES // max(row_bytes, 1))
    tile = min(tile, _MAX_TILE_ROWS, rows)
    tile = max(sublane, (tile // sublane) * sublane)
    # Keep >= 2 grid steps so the "parallel" row axis can shard across the two
    # TensorCores on v7x and the DMA/compute pipeline has something to overlap.
    while pl.cdiv(rows, tile) < 2 and tile >= 2 * sublane:
        tile = max(sublane, (tile // 2 // sublane) * sublane)
    return tile


def _rmsnorm_kernel(x_ref, w_ref, o_ref, *, eps: float):
    """Standard path: one logical row per physical row (hidden on the lane axis)."""
    x = x_ref[...].astype(jnp.float32)
    variance = jnp.mean(x * x, axis=-1, keepdims=True)    # XLU reduce
    inv = jax.lax.rsqrt(variance + eps)                    # EUP
    w = w_ref[...].astype(jnp.float32)                     # (1, hidden) broadcast
    o_ref[...] = (x * inv * w).astype(o_ref.dtype)


def _rmsnorm_packed_kernel(x_ref, w_ref, o_ref, *, eps: float, hidden: int):
    """Lane-dense path: `pack = P // hidden` logical rows per physical row.

    Per-segment sum(x^2) is one block-diagonal matmul so both the reduction
    and the broadcast-back stay full-lane-width (no masked stores).
    """
    x = x_ref[...].astype(jnp.float32)                      # (tile_rows, P)
    p = x.shape[-1]
    x2 = x * x
    shift = int(hidden).bit_length() - 1                    # hidden is a power of 2 here
    row_ids = jax.lax.broadcasted_iota(jnp.int32, (p, p), 0)
    col_ids = jax.lax.broadcasted_iota(jnp.int32, (p, p), 1)
    same_seg = jax.lax.shift_right_logical(row_ids, shift) == \
        jax.lax.shift_right_logical(col_ids, shift)
    blockdiag = jnp.where(same_seg, 1.0, 0.0).astype(jnp.float32)
    # HIGHEST keeps full f32 precision through the MXU (matches the reference).
    sumsq = jnp.dot(x2, blockdiag, preferred_element_type=jnp.float32,
                    precision=jax.lax.Precision.HIGHEST)    # (tile_rows, P)
    inv = jax.lax.rsqrt(sumsq * (1.0 / hidden) + eps)
    w = w_ref[...].astype(jnp.float32)                      # (1, P): weight tiled per segment
    o_ref[...] = (x * inv * w).astype(o_ref.dtype)


def t5_layer_norm(x: jax.Array, weight: jax.Array, eps: float = 1e-6) -> jax.Array:
    """RMSNorm over the last axis of x, scaled by `weight` (shape [hidden])."""
    orig_shape = x.shape
    hidden = orig_shape[-1]
    rows = 1
    for d in orig_shape[:-1]:
        rows *= d

    itemsize = jnp.dtype(x.dtype).itemsize
    sublane = _sublane(x.dtype)

    # Lane-dense packing for narrow hidden (divisor of 128 => power of two).
    pack = _LANES // hidden if (hidden < _LANES and _LANES % hidden == 0) else 1
    if pack > 1 and rows % pack == 0:
        p = pack * hidden
        kernel = functools.partial(_rmsnorm_packed_kernel, eps=eps, hidden=hidden)
        x2d = x.reshape(rows // pack, p)
        w2d = jnp.tile(weight.reshape(1, hidden), (1, pack))
    else:
        # TODO(synk): hidden < 128 that is not a divisor of 128 (or rows % pack
        # != 0) still takes the lane-sparse layout below (masked stores).
        p = hidden
        kernel = functools.partial(_rmsnorm_kernel, eps=eps)
        x2d = x.reshape(rows, hidden)
        w2d = weight.reshape(1, hidden)

    n_rows = x2d.shape[0]
    row_bytes = p * itemsize
    tile_rows = _choose_tile_rows(n_rows, row_bytes, sublane)
    grid = (pl.cdiv(n_rows, tile_rows),)

    # VMEM budget: 2x double-buffered input + 2x output tiles, f32 working
    # copies, weight, plus slack.  Capped to fit v7x's 64 MiB physical VMEM.
    tile_bytes = tile_rows * row_bytes
    f32_tile = tile_rows * p * 4
    vmem_limit = 4 * tile_bytes + 4 * f32_tile + 4 * p * 4 + (4 << 20)
    vmem_limit = int(min(max(vmem_limit, 32 << 20), 64 << 20))

    cost = pl.CostEstimate(
        flops=5 * rows * hidden,
        transcendentals=rows,
        bytes_accessed=2 * rows * hidden * itemsize + hidden * 4,
    )

    out = pl.pallas_call(
        kernel,
        out_shape=jax.ShapeDtypeStruct(x2d.shape, x.dtype),
        grid_spec=pltpu.PrefetchScalarGridSpec(
            num_scalar_prefetch=0,
            grid=grid,
            in_specs=[
                pl.BlockSpec((tile_rows, p), lambda i: (i, 0)),
                pl.BlockSpec((1, p), lambda i: (0, 0)),
            ],
            out_specs=pl.BlockSpec((tile_rows, p), lambda i: (i, 0)),
        ),
        compiler_params=pltpu.CompilerParams(
            dimension_semantics=("parallel",),
            vmem_limit_bytes=vmem_limit,
        ),
        cost_estimate=cost,
    )(x2d, w2d)
    return out.reshape(orig_shape)


def _reference(x, weight, eps=1e-6):
    xf = x.astype(jnp.float32)
    variance = jnp.mean(xf * xf, axis=-1, keepdims=True)
    y = xf * jax.lax.rsqrt(variance + eps)
    return (weight.astype(jnp.float32) * y).astype(x.dtype)


if __name__ == "__main__":
    key = jax.random.PRNGKey(0)
    kx, kw, kx2, kw2 = jax.random.split(key, 4)

    # Shape from the original pnnx test module: (batch=2, seq=8, hidden=32).
    batch, seq, hidden = 2, 8, 32
    weight = jax.random.uniform(kw, (hidden,), dtype=jnp.float32)
    x = jax.random.normal(kx, (batch, seq, hidden), dtype=jnp.float32)

    out = jax.block_until_ready(t5_layer_norm(x, weight, eps=1e-6))
    ref = _reference(x, weight, eps=1e-6)
    assert out.shape == x.shape and out.dtype == x.dtype
    assert jnp.allclose(out, ref, atol=1e-5, rtol=1e-5), "mismatch (packed path)"

    # Also exercise the wide-hidden (natively lane-dense) path.
    b2, s2, h2 = 2, 64, 256
    weight2 = jax.random.uniform(kw2, (h2,), dtype=jnp.float32)
    x2 = jax.random.normal(kx2, (b2, s2, h2), dtype=jnp.float32)
    out2 = jax.block_until_ready(t5_layer_norm(x2, weight2, eps=1e-6))
    ref2 = _reference(x2, weight2, eps=1e-6)
    assert jnp.allclose(out2, ref2, atol=1e-5, rtol=1e-5), "mismatch (wide path)"

    print("KERNEL_OK")
</pallas_src>

<mosaic_0001>
module attributes {stable_mosaic.version = 11 : i64} {
  func.func @_rmsnorm_packed_kernel(%arg0: i32, %arg1: memref<4x128xf32, #tpu.memory_space<vmem>>, %arg2: memref<1x128xf32, #tpu.memory_space<vmem>>, %arg3: memref<4x128xf32, #tpu.memory_space<vmem>>) attributes {dimension_semantics = [#tpu.dimension_semantics<parallel>], iteration_bounds = array<i64: 1>, scalar_prefetch = 0 : i64, scratch_operands = 0 : i64, tpu.core_type = #tpu.core_type<tc>, window_params = [{transform_indices = @transform_0, window_bounds = array<i64: 4, 128>}, {pipeline_mode = #tpu.pipeline_mode<synchronous>, transform_indices = @transform_1, window_bounds = array<i64: 1, 128>}, {transform_indices = @transform_2, window_bounds = array<i64: 4, 128>}]} {
    %c0 = arith.constant 0 : index
    %c0_0 = arith.constant 0 : index
    %0 = vector.load %arg1[%c0, %c0_0] : memref<4x128xf32, #tpu.memory_space<vmem>>, vector<4x128xf32>
    %1 = arith.mulf %0, %0 : vector<4x128xf32>
    %2 = tpu.iota {dimensions = array<i32: 0>} : vector<128x128xi32>
    %3 = tpu.iota {dimensions = array<i32: 1>} : vector<128x128xi32>
    %c5_i32 = arith.constant 5 : i32
    %4 = vector.broadcast %c5_i32 : i32 to vector<128x128xi32>
    %5 = arith.shrui %2, %4 : vector<128x128xi32>
    %c5_i32_1 = arith.constant 5 : i32
    %6 = vector.broadcast %c5_i32_1 : i32 to vector<128x128xi32>
    %7 = arith.shrui %3, %6 : vector<128x128xi32>
    %8 = arith.cmpi eq, %5, %7 : vector<128x128xi32>
    %cst = arith.constant 1.000000e+00 : f32
    %cst_2 = arith.constant 0.000000e+00 : f32
    %9 = vector.broadcast %cst : f32 to vector<128x128xf32>
    %10 = vector.broadcast %cst_2 : f32 to vector<128x128xf32>
    %11 = arith.select %8, %9, %10 : vector<128x128xi1>, vector<128x128xf32>
    %cst_3 = arith.constant dense<0.000000e+00> : vector<4x128xf32>
    %12 = tpu.matmul %1, %11, %cst_3 {dimension_numbers = #tpu.dot_dimension_numbers<[1], [0], [0], [1], [0, 0, 1, 1], [], []>, precision = #tpu.contract_precision<fp32>} : vector<4x128xf32>, vector<128x128xf32>, vector<4x128xf32> -> vector<4x128xf32>
    %cst_4 = arith.constant 3.125000e-02 : f32
    %13 = vector.broadcast %cst_4 : f32 to vector<4x128xf32>
    %14 = arith.mulf %12, %13 : vector<4x128xf32>
    %cst_5 = arith.constant 9.99999997E-7 : f32
    %15 = vector.broadcast %cst_5 : f32 to vector<4x128xf32>
    %16 = arith.addf %14, %15 : vector<4x128xf32>
    %17 = math.rsqrt %16 : vector<4x128xf32>
    %c0_6 = arith.constant 0 : index
    %c0_7 = arith.constant 0 : index
    %18 = vector.load %arg2[%c0_6, %c0_7] : memref<1x128xf32, #tpu.memory_space<vmem>>, vector<1x128xf32>
    %19 = arith.mulf %0, %17 : vector<4x128xf32>
    %20 = vector.broadcast %18 : vector<1x128xf32> to vector<4x128xf32>
    %21 = arith.mulf %19, %20 : vector<4x128xf32>
    %c0_8 = arith.constant 0 : index
    %c0_9 = arith.constant 0 : index
    %22 = vector.load %arg3[%c0_8, %c0_9] : memref<4x128xf32, #tpu.memory_space<vmem>>, vector<4x128xf32>
    tpu.vector_store %arg3[%c0_8, %c0_9], %21 {strides = array<i32>} : memref<4x128xf32, #tpu.memory_space<vmem>>, vector<4x128xf32>,
    return
  }
  func.func @transform_0(%arg0: i32) -> (i32, i32) {
    %c0_i32 = arith.constant 0 : i32
    %c0_i32_0 = arith.constant 0 : i32
    return %arg0, %c0_i32 : i32, i32
  }
  func.func @transform_1(%arg0: i32) -> (i32, i32) {
    %c0_i32 = arith.constant 0 : i32
    %c0_i32_0 = arith.constant 0 : i32
    %c0_i32_1 = arith.constant 0 : i32
    return %c0_i32, %c0_i32_0 : i32, i32
  }
  func.func @transform_2(%arg0: i32) -> (i32, i32) {
    %c0_i32 = arith.constant 0 : i32
    %c0_i32_0 = arith.constant 0 : i32
    return %arg0, %c0_i32 : i32, i32
  }
}

</mosaic_0001>

<bundles_post_ra>
// kernel: tpu_custom_call.1
= control target key start
LH: loop header
LB: loop body
LE: loop exit
PB: predicated region body
PF: predicated region fallthrough
CT: control target
= control target key end

     0   :  { %7 = vsyncpa [#allocation3], 0  ;;  %s1729_s0 = inlined_call_operand.hbm [shape: f32[4,128], index: 0, kind: input, shape index: {}]   ;;  %s1730_s1 = inlined_call_operand.vmem [shape: f32[1,128], index: 1, kind: input, shape index: {}]   ;;  %s1731_s2 = inlined_call_operand.hbm [shape: f32[4,128], index: 2, kind: output, shape index: {}]  }
   0x1   :  { %8 = vsyncpa [#allocation4], 0  ;;  %s1237_s9 = smov [#allocation2]   ;;  %s1189_s13 = scalar_lea.hbm %s1729_s0, 64 }
   0x2   :  { %s15_s10 = sshll.u32 %s1237_s9, 4  ;;  %p1190_p0 = scmp.ne.s32.totalorder %s1729_s0, %s1189_s13  ;;  %s16_s10 = int_to_ptr.vmem [resolvable:$true] %s15_s10 }
   0x3   :  { %p1193_p1 = scmp.lt.u32.totalorder %s1189_s13, %s1729_s0 }
   0x5   :  { %p1195_p2 = pnand %p1193_p1, %p1190_p0 }
   0x7   :  { %1198 = shalt.err (!%p1195_p2)
}
   0x8   :  { %s1199_s18 = scalar_lea.vmem %s16_s10, 64  ;;  %p1204_p4 = scmp.lt.s32.totalorder %s16_s10, %s16_s10 }
   0x9   :  { %p1200_p3 = scmp.ne.s32.totalorder %s16_s10, %s1199_s18  ;;  %p1205_p5 = scmp.lt.s32.totalorder %s1199_s18, %s1199_s18 }
   0xb   :  { %p1206_p6 = por %p1205_p5, %p1204_p4 }
   0xd   :  { %p1207_p7 = pnand %p1206_p6, %p1200_p3 }
   0xf   :  { %1210 = shalt.err (!%p1207_p7)
}
  0x10   :  { %18 = dma.hbm_to_vmem [thread:$0]  %s1729_s0, 64, %s16_s10, [#allocation3]   ;;  %v26_v0 = vlaneseq }
  0x11   :  { %1233 = dma.done.wait [#allocation3], 64  }
  0x12   :  { %1234 = vsyncadd [#allocation3], 4294967232  ;;  %v1238_v1 = vmov 0.0|0.0   ;;  %v1272_v2 = vshrl.u32 %v26_v0, 7  ;;  %v44_v3 = vand.u32 127, %v26_v0  ;;  %vm1239_vm0 = vmmov 0  }
  0x13   :  { %1028 = vmatprep.subr.bf16.mxu1 %v1238_v1  ;;  %1100 = vmatprep.subr.bf16.mxu0 %v1238_v1  ;;  %v1240_v4 = vmov 0.0   ;;  %v1241_v24 = vmov 1.0|1.0   ;;  %v1434_v56 = vld [vmem:[#allocation2] sm:$0xf]  ;;  %s1242_s22 = smov [#allocation5]  }
  0x14   :  { %850 = vmatprep.mubr.msk.f32.mxu1 %vm1239_vm0, %v1240_v4  ;;  %955 = vmatprep.mubr.msk.f32.mxu0 %vm1239_vm0, %v1240_v4  ;;  %v28_v5 = vadd.s32 8, %v1272_v2  ;;  %v45_v6 = vshrl.u32 %v1272_v2, 5  ;;  %v1280_v7 = vshrl.u32 %v44_v3, 5  ;;  %v29_v8 = vadd.s32 16, %v1272_v2  ;;  %s658_s23 = sshll.u32 %s1242_s22, 4  ;;  %s659_s23 = int_to_ptr.vmem [resolvable:$true] %s658_s23 }
  0x15   :  { %v30_v9 = vadd.s32 24, %v1272_v2  ;;  %v31_v10 = vadd.s32 32, %v1272_v2  ;;  %v32_v11 = vadd.s32 40, %v1272_v2  ;;  %v33_v16 = vadd.s32 48, %v1272_v2  ;;  %s1211_s24 = scalar_lea.vmem %s659_s23, 64  ;;  %p1216_p9 = scmp.lt.s32.totalorder %s659_s23, %s659_s23 }
  0x16   :  { %v46_v12 = vshrl.u32 %v28_v5, 5  ;;  %vm1287_vm1 = vcmp.eq.s32.totalorder %v45_v6, %v1280_v7  ;;  %v47_v14 = vshrl.u32 %v29_v8, 5  ;;  %v34_v17 = vadd.s32 56, %v1272_v2  ;;  %p1212_p8 = scmp.ne.s32.totalorder %s659_s23, %s1211_s24  ;;  %p1217_p10 = scmp.lt.s32.totalorder %s1211_s24, %s1211_s24 }
  0x17   :  { %v48_v15 = vshrl.u32 %v30_v9, 5  ;;  %v49_v20 = vshrl.u32 %v31_v10, 5  ;;  %v50_v21 = vshrl.u32 %v32_v11, 5  ;;  %v51_v28 = vshrl.u32 %v33_v16, 5 }
  0x18   :  { %vm1294_vm2 = vcmp.eq.s32.totalorder %v46_v12, %v1280_v7  ;;  %vm1299_vm3 = vcmp.eq.s32.totalorder %v47_v14, %v1280_v7  ;;  %v52_v29 = vshrl.u32 %v34_v17, 5  ;;  %v78_v30 = vsel %vm1287_vm1, 1.0, %v1240_v4  ;;  %p1218_p11 = por %p1217_p10, %p1216_p9 }
  0x19   :  { %vm1307_vm4 = vmpackc.low %vm1294_vm2, %vm1287_vm1  ;;  %vm1312_vm5 = vcmp.eq.s32.totalorder %v48_v15, %v1280_v7  ;;  %vm1333_vm7 = vcmp.eq.s32.totalorder %v49_v20, %v1280_v7  ;;  %vm1338_vm8 = vcmp.eq.s32.totalorder %v50_v21, %v1280_v7  ;;  %vm1362_vm10 = vcmp.eq.s32.totalorder %v51_v28, %v1280_v7 }
  0x1a   :  { %1030 = vmatpush3.bf16.msk.msra.mxu1 %vm1307_vm4, %v1241_v24  ;;  %1102 = vmatpush3.bf16.msk.msra.mxu0 %vm1307_vm4, %v1241_v24  ;;  %vm1328_vm6 = vmpackc.low %vm1312_vm5, %vm1299_vm3  ;;  %vm1367_vm11 = vcmp.eq.s32.totalorder %v52_v29, %v1280_v7  ;;  %v35_v34 = vadd.s32 64, %v1272_v2  ;;  %v36_v35 = vadd.s32 72, %v1272_v2  ;;  %v37_v36 = vadd.s32 80, %v1272_v2  ;;  %p1219_p12 = pnand %p1218_p11, %p1212_p8 }
  0x1b   :  { %1031 = vmatprep.subr.bf16.mxu1 %v1238_v1  ;;  %1103 = vmatprep.subr.bf16.mxu0 %v1238_v1  ;;  %vm1357_vm9 = vmpackc.low %vm1338_vm8, %vm1333_vm7  ;;  %v38_v37 = vadd.s32 88, %v1272_v2  ;;  %v79_v38 = vsel %vm1294_vm2, 1.0, %v1240_v4  ;;  %v1384_v41 = vsub.f32 %v78_v30, %v78_v30  ;;  %v39_v43 = vadd.s32 96, %v1272_v2 }
  0x1c   :  { %v53_v39 = vshrl.u32 %v35_v34, 5  ;;  %v54_v40 = vshrl.u32 %v36_v35, 5  ;;  %vm1392_vm12 = vmpackc.low %vm1367_vm11, %vm1362_vm10  ;;  %v40_v44 = vadd.s32 104, %v1272_v2  ;;  %v55_v47 = vshrl.u32 %v37_v36, 5 }
  0x1d   :  { %v56_v48 = vshrl.u32 %v38_v37, 5  ;;  %v1408_v49 = vsub.f32 %v79_v38, %v79_v38  ;;  %v80_v50 = vsel %vm1299_vm3, 1.0, %v1240_v4  ;;  %v171_v51 = vand.u32 4294901760, %v1384_v41 }
  0x1e   :  { %1033 = vmatpush3.bf16.msk.msra.mxu1 %vm1328_vm6, %v1241_v24  ;;  %1105 = vmatpush3.bf16.msk.msra.mxu0 %vm1328_vm6, %v1241_v24  ;;  %vm1399_vm13 = vcmp.eq.s32.totalorder %v53_v39, %v1280_v7  ;;  %vm1404_vm14 = vcmp.eq.s32.totalorder %v54_v40, %v1280_v7  ;;  %v81_v52 = vsel %vm1312_vm5, 1.0, %v1240_v4  ;;  %v57_v54 = vshrl.u32 %v39_v43, 5 }
  0x1f   :  { %1034 = vmatprep.subr.bf16.mxu1 %v1238_v1  ;;  %1106 = vmatprep.subr.bf16.mxu0 %v1238_v1  ;;  %vm1429_vm15 = vmpackc.low %vm1404_vm14, %vm1399_vm13  ;;  %v41_v55 = vadd.s32 112, %v1272_v2  ;;  %vm1437_vm1 = vcmp.eq.s32.totalorder %v55_v47, %v1280_v7  ;;  %vm1442_vm2 = vcmp.eq.s32.totalorder %v56_v48, %v1280_v7  ;;  %v58_v59 = vshrl.u32 %v40_v44, 5 }
  0x20   :  { %v42_v60 = vadd.s32 120, %v1272_v2  ;;  %v177_v61 = vand.u32 4294901760, %v1408_v49  ;;  %v1448_v62 = vsub.f32 %v80_v50, %v80_v50  ;;  %v1450_v63 = vsub.f32 %v81_v52, %v81_v52  ;;  %vm1478_vm3 = vmpackc.low %vm1442_vm2, %vm1437_vm1 }
  0x21   :  { %v82_v0 = vsel %vm1333_vm7, 1.0, %v1240_v4  ;;  %v25_v2 = vmul.f32 %v1434_v56, %v1434_v56  ;;  %v172_v3 = vsub.f32 %v1384_v41, %v171_v51  ;;  %v83_v5 = vsel %vm1338_vm8, 1.0, %v1240_v4 }
  0x22   :  { %1036 = vmatpush3.bf16.msk.msra.mxu1 %vm1357_vm9, %v1241_v24  ;;  %1108 = vmatpush3.bf16.msk.msra.mxu0 %vm1357_vm9, %v1241_v24  ;;  %v84_v6 = vsel %vm1362_vm10, 1.0, %v1240_v4  ;;  %vm1483_vm5 = vcmp.eq.s32.totalorder %v57_v54, %v1280_v7  ;;  %vm1488_vm7 = vcmp.eq.s32.totalorder %v58_v59, %v1280_v7  ;;  %v59_v11 = vshrl.u32 %v41_v55, 5 }
  0x23   :  { %1037 = vmatprep.subr.bf16.mxu1 %v1238_v1  ;;  %1109 = vmatprep.subr.bf16.mxu0 %v1238_v1  ;;  %v60_v12 = vshrl.u32 %v42_v60, 5  ;;  %v1492_v13 = vand.u32 4294901760, %v25_v2  ;;  %v178_v14 = vsub.f32 %v1408_v49, %v177_v61  ;;  %v1495_v15 = vsub.f32 %v82_v0, %v82_v0  ;;  %vm1521_vm8 = vmpackc.low %vm1488_vm7, %vm1483_vm5 }
  0x24   :  { %v85_v16 = vsel %vm1367_vm11, 1.0, %v1240_v4  ;;  %v183_v17 = vand.u32 4294901760, %v1448_v62  ;;  %v189_v18 = vand.u32 4294901760, %v1450_v63  ;;  %v1502_v19 = vsub.f32 %v83_v5, %v83_v5 }
  0x25   :  { %v1511_v20 = vsub.f32 %v25_v2, %v1492_v13  ;;  %v173_v21 = vand.u32 4294901760, %v172_v3  ;;  %v1513_v23 = vsub.f32 %v84_v6, %v84_v6  ;;  %v1525_v27 = vsub.f32 %v85_v16, %v85_v16 }
  0x26   :  { %1039 = vmatpush3.bf16.msk.msra.mxu1 %vm1392_vm12, %v1241_v24  ;;  %1111 = vmatpush3.bf16.msk.msra.mxu0 %vm1392_vm12, %v1241_v24  ;;  %vm1528_vm10 = vcmp.eq.s32.totalorder %v59_v11, %v1280_v7  ;;  %vm1533_vm11 = vcmp.eq.s32.totalorder %v60_v12, %v1280_v7  ;;  %v179_v32 = vand.u32 4294901760, %v178_v14  ;;  %v195_v33 = vand.u32 4294901760, %v1495_v15 }
  0x27   :  { %1040 = vmatprep.subr.bf16.mxu1 %v1238_v1  ;;  %1112 = vmatprep.subr.bf16.mxu0 %v1238_v1  ;;  %v161_v30 = vand.u32 4294901760, %v1511_v20  ;;  %v86_v34 = vsel %vm1399_vm13, 1.0, %v1240_v4  ;;  %v87_v35 = vsel %vm1404_vm14, 1.0, %v1240_v4  ;;  %v201_v36 = vand.u32 4294901760, %v1502_v19  ;;  %vm1562_vm13 = vmpackc.low %vm1533_vm11, %vm1528_vm10 }
  0x28   :  { %v184_v37 = vsub.f32 %v1448_v62, %v183_v17  ;;  %v190_v38 = vsub.f32 %v1450_v63, %v189_v18  ;;  %v207_v39 = vand.u32 4294901760, %v1513_v23  ;;  %v213_v43 = vand.u32 4294901760, %v1525_v27 }
  0x29   :  { %v162_v7 = vsub.f32 %v1511_v20, %v161_v30  ;;  %v1567_v44 = vsub.f32 %v86_v34, %v86_v34  ;;  %v1569_v45 = vsub.f32 %v87_v35, %v87_v35  ;;  %v88_v46 = vsel %vm1437_vm1, 1.0, %v1240_v4 }
  0x2a   :  { %1042 = vmatpush3.bf16.msk.msra.mxu1 %vm1429_vm15, %v1241_v24  ;;  %1114 = vmatpush3.bf16.msk.msra.mxu0 %vm1429_vm15, %v1241_v24  ;;  %v89_v47 = vsel %vm1442_vm2, 1.0, %v1240_v4  ;;  %v1053_v50 = vpack.c.bf16 %v179_v32, %v173_v21  ;;  %v1125_v52 = vpack.c.bf16 %v177_v61, %v171_v51  ;;  %v185_v54 = vand.u32 4294901760, %v184_v37 }
  0x2b   :  { %1043 = vmatprep.subr.bf16.mxu1 %v1238_v1  ;;  %1115 = vmatprep.subr.bf16.mxu0 %v1238_v1  ;;  %v163_v48 = vand.u32 4294901760, %v162_v7  ;;  %v191_v55 = vand.u32 4294901760, %v190_v38  ;;  %v196_v57 = vsub.f32 %v1495_v15, %v195_v33  ;;  %v202_v58 = vsub.f32 %v1502_v19, %v201_v36 }
  0x2c   :  { %v219_v51 = vand.u32 4294901760, %v1567_v44  ;;  %v225_v59 = vand.u32 4294901760, %v1569_v45  ;;  %v1591_v60 = vsub.f32 %v88_v46, %v88_v46  ;;  %v1593_v61 = vsub.f32 %v89_v47, %v89_v47 }
  0x2d   :  { %v90_v0 = vsel %vm1483_vm5, 1.0, %v1240_v4  ;;  %v91_v2 = vsel %vm1488_vm7, 1.0, %v1240_v4  ;;  %v1128_v3 = vpack.c.bf16 %v189_v18, %v183_v17  ;;  %v208_v5 = vsub.f32 %v1513_v23, %v207_v39 }
  0x2e   :  { %1045 = vmatpush3.bf16.msk.msra.mxu1 %vm1478_vm3, %v1241_v24  ;;  %1117 = vmatpush3.bf16.msk.msra.mxu0 %vm1478_vm3, %v1241_v24  ;;  %v1056_v6 = vpack.c.bf16 %v191_v55, %v185_v54  ;;  %v197_v11 = vand.u32 4294901760, %v196_v57  ;;  %v203_v12 = vand.u32 4294901760, %v202_v58  ;;  %v214_v14 = vsub.f32 %v1525_v27, %v213_v43 }
  0x2f   :  { %1046 = vmatprep.subr.bf16.mxu1 %v1238_v1  ;;  %1118 = vmatprep.subr.bf16.mxu0 %v1238_v1  ;;  %v231_v9 = vand.u32 4294901760, %v1591_v60  ;;  %v237_v10 = vand.u32 4294901760, %v1593_v61  ;;  %v1607_v16 = vsub.f32 %v90_v0, %v90_v0  ;;  %v1609_v17 = vsub.f32 %v91_v2, %v91_v2 }
  0x30   :  { %v92_v18 = vsel %vm1528_vm10, 1.0, %v1240_v4  ;;  %v93_v21 = vsel %vm1533_vm11, 1.0, %v1240_v4  ;;  %v209_v32 = vand.u32 4294901760, %v208_v5  ;;  %v1059_v34 = vpack.c.bf16 %v203_v12, %v197_v11 }
  0x31   :  { %v215_v35 = vand.u32 4294901760, %v214_v14  ;;  %v220_v7 = vsub.f32 %v1567_v44, %v219_v51  ;;  %v226_v37 = vsub.f32 %v1569_v45, %v225_v59  ;;  %v243_v28 = vand.u32 4294901760, %v1607_v16 }
  0x32   :  { %1048 = vmatpush3.bf16.msk.msra.mxu1 %vm1521_vm8, %v1241_v24  ;;  %1120 = vmatpush3.bf16.msk.msra.mxu0 %vm1521_vm8, %v1241_v24  ;;  %v249_v38 = vand.u32 4294901760, %v1609_v17  ;;  %v1627_v29 = vsub.f32 %v92_v18, %v92_v18  ;;  %v232_v46 = vsub.f32 %v1591_v60, %v231_v9  ;;  %v1137_v57 = vpack.c.bf16 %v225_v59, %v219_v51 }
  0x33   :  { %1049 = vmatprep.subr.bf16.mxu1 %v1238_v1  ;;  %1121 = vmatprep.subr.bf16.mxu0 %v1238_v1  ;;  %v1062_v47 = vpack.c.bf16 %v215_v35, %v209_v32  ;;  %v1080_v32 = vpack.c.bf16 %v1450_v63, %v1448_v62  ;;  %v1083_v22 = vpack.c.bf16 %v1502_v19, %v1495_v15 }
  0x34   :  { %v255_v54 = vand.u32 4294901760, %v1627_v29  ;;  %v233_v58 = vand.u32 4294901760, %v232_v46  ;;  %v250_v2 = vsub.f32 %v1609_v17, %v249_v38  ;;  %v1143_v14 = vpack.c.bf16 %v249_v38, %v243_v28 }
  0x35   :  { %v1089_v25 = vpack.c.bf16 %v1569_v45, %v1567_v44  ;;  %v1092_v31 = vpack.c.bf16 %v1593_v61, %v1591_v60 }
  0x36   :  { %1051 = vmatpush3.bf16.msk.msra.mxu1 %vm1562_vm13, %v1241_v24  ;;  %1123 = vmatpush3.bf16.msk.msra.mxu0 %vm1562_vm13, %v1241_v24  ;;  %v251_v11 = vand.u32 4294901760, %v250_v2  ;;  %v256_v51 = vsub.f32 %v1627_v29, %v255_v54 }
  0x37   :  { %1052 = vmatprep.subr.bf16.mxu1 %v1238_v1  ;;  %1124 = vmatprep.subr.bf16.mxu0 %v1238_v1 }
  0x38   :  { %v257_v18 = vand.u32 4294901760, %v256_v51 }
  0x39   :  { %851 = vmatmul.mubr.f32.vlgmr.msra.gmra.mrb[0].mxu1 %v163_v48  ;;  %956 = vmatmul.mubr.f32.vlgmr.msra.gmra.mrb[0].mxu0 %v161_v30  ;;  %v1131_v30 = vpack.c.bf16 %v201_v36, %v195_v33  ;;  %v1629_v33 = vsub.f32 %v93_v21, %v93_v21  ;;  %v1134_v36 = vpack.c.bf16 %v213_v43, %v207_v39  ;;  %v221_v48 = vand.u32 4294901760, %v220_v7 }
  0x3a   :  { %1054 = vmatpush3.bf16.msra.mxu1 %v1053_v50  ;;  %1126 = vmatpush3.bf16.msra.mxu0 %v1125_v52  ;;  %v227_v50 = vand.u32 4294901760, %v226_v37  ;;  %v238_v52 = vsub.f32 %v1593_v61, %v237_v10  ;;  %v244_v39 = vsub.f32 %v1607_v16, %v243_v28 }
  0x3b   :  { %1055 = vmatprep.subr.bf16.mxu1 %v1238_v1  ;;  %1127 = vmatprep.subr.bf16.mxu0 %v1238_v1  ;;  %v261_v55 = vand.u32 4294901760, %v1629_v33  ;;  %v1098_v42 = vpack.c.bf16 %v1629_v33, %v1627_v29 }
  0x3c   :  { %885 = vmatprep.mubr.msk.f32.mxu1 %vm1239_vm0, %v1240_v4  ;;  %990 = vmatprep.mubr.msk.f32.mxu0 %vm1239_vm0, %v1240_v4  ;;  %v1065_v43 = vpack.c.bf16 %v227_v50, %v221_v48  ;;  %v239_v0 = vand.u32 4294901760, %v238_v52  ;;  %v245_v5 = vand.u32 4294901760, %v244_v39 }
  0x3d   :  { %v262_v59 = vsub.f32 %v1629_v33, %v261_v55 }
  0x3e   :  { %1057 = vmatpush3.bf16.msra.mxu1 %v1056_v6  ;;  %1129 = vmatpush3.bf16.msra.mxu0 %v1128_v3  ;;  %v1140_v3 = vpack.c.bf16 %v237_v10, %v231_v9  ;;  %v1068_v6 = vpack.c.bf16 %v239_v0, %v233_v58  ;;  %v1071_v12 = vpack.c.bf16 %v251_v11, %v245_v5 }
  0x3f   :  { %1058 = vmatprep.subr.bf16.mxu1 %v1238_v1  ;;  %1130 = vmatprep.subr.bf16.mxu0 %v1238_v1  ;;  %v263_v21 = vand.u32 4294901760, %v262_v59  ;;  %v1146_v10 = vpack.c.bf16 %v261_v55, %v255_v54 }
  0x41   :  { %v1074_v9 = vpack.c.bf16 %v263_v21, %v257_v18 }
  0x42   :  { %1060 = vmatpush3.bf16.msra.mxu1 %v1059_v34  ;;  %1132 = vmatpush3.bf16.msra.mxu0 %v1131_v30  ;;  %v1077_v30 = vpack.c.bf16 %v1408_v49, %v1384_v41  ;;  %v1095_v41 = vpack.c.bf16 %v1609_v17, %v1607_v16 }
  0x43   :  { %1061 = vmatprep.subr.bf16.mxu1 %v1238_v1  ;;  %1133 = vmatprep.subr.bf16.mxu0 %v1238_v1 }
  0x46   :  { %1063 = vmatpush3.bf16.msra.mxu1 %v1062_v47  ;;  %1135 = vmatpush3.bf16.msra.mxu0 %v1134_v36 }
  0x47   :  { %1064 = vmatprep.subr.bf16.mxu1 %v1238_v1  ;;  %1136 = vmatprep.subr.bf16.mxu0 %v1238_v1 }
  0x4a   :  { %1066 = vmatpush3.bf16.msra.mxu1 %v1065_v43  ;;  %1138 = vmatpush3.bf16.msra.mxu0 %v1137_v57 }
  0x4b   :  { %1067 = vmatprep.subr.bf16.mxu1 %v1238_v1  ;;  %1139 = vmatprep.subr.bf16.mxu0 %v1238_v1 }
  0x4e   :  { %1069 = vmatpush3.bf16.msra.mxu1 %v1068_v6  ;;  %1141 = vmatpush3.bf16.msra.mxu0 %v1140_v3 }
  0x4f   :  { %1070 = vmatprep.subr.bf16.mxu1 %v1238_v1  ;;  %1142 = vmatprep.subr.bf16.mxu0 %v1238_v1 }
  0x52   :  { %1072 = vmatpush3.bf16.msra.mxu1 %v1071_v12  ;;  %1144 = vmatpush3.bf16.msra.mxu0 %v1143_v14 }
  0x53   :  { %1073 = vmatprep.subr.bf16.mxu1 %v1238_v1  ;;  %1145 = vmatprep.subr.bf16.mxu0 %v1238_v1 }
  0x56   :  { %1075 = vmatpush3.bf16.msra.mxu1 %v1074_v9  ;;  %1147 = vmatpush3.bf16.msra.mxu0 %v1146_v10 }
  0x57   :  { %1076 = vmatprep.subr.bf16.mxu1 %v1238_v1  ;;  %1148 = vmatprep.subr.bf16.mxu0 %v1238_v1 }
  0x59   :  { %886 = vmatmul.mubr.f32.vlgmr.msra.gmra.mrb[0].mxu1 %v1492_v13  ;;  %991 = vmatmul.mubr.f32.vlgmr.msra.gmra.mrb[0].mxu0 %v1492_v13 }
  0x5a   :  { %1078 = vmatpush3.bf16.msra.mxu1 %v1077_v30  ;;  %1150 = vmatpush3.bf16.msk.msra.mxu0 %vm1307_vm4, %v1241_v24 }
  0x5b   :  { %1079 = vmatprep.subr.bf16.mxu1 %v1238_v1  ;;  %1151 = vmatprep.subr.bf16.mxu0 %v1238_v1 }
  0x5c   :  { %920 = vmatprep.mubr.msk.f32.mxu1 %vm1239_vm0, %v1240_v4  ;;  %1025 = vmatprep.mubr.msk.f32.mxu0 %vm1239_vm0, %v1240_v4  ;;  %v1086_v4 = vpack.c.bf16 %v1525_v27, %v1513_v23 }
  0x5e   :  { %1081 = vmatpush3.bf16.msra.mxu1 %v1080_v32  ;;  %1153 = vmatpush3.bf16.msk.msra.mxu0 %vm1328_vm6, %v1241_v24 }
  0x5f   :  { %1082 = vmatprep.subr.bf16.mxu1 %v1238_v1  ;;  %1154 = vmatprep.subr.bf16.mxu0 %v1238_v1 }
  0x62   :  { %1084 = vmatpush3.bf16.msra.mxu1 %v1083_v22  ;;  %1156 = vmatpush3.bf16.msk.msra.mxu0 %vm1357_vm9, %v1241_v24 }
  0x63   :  { %1085 = vmatprep.subr.bf16.mxu1 %v1238_v1  ;;  %1157 = vmatprep.subr.bf16.mxu0 %v1238_v1 }
  0x66   :  { %1087 = vmatpush3.bf16.msra.mxu1 %v1086_v4  ;;  %1159 = vmatpush3.bf16.msk.msra.mxu0 %vm1392_vm12, %v1241_v24 }
  0x67   :  { %1088 = vmatprep.subr.bf16.mxu1 %v1238_v1  ;;  %1160 = vmatprep.subr.bf16.mxu0 %v1238_v1 }
  0x6a   :  { %1090 = vmatpush3.bf16.msra.mxu1 %v1089_v25  ;;  %1162 = vmatpush3.bf16.msk.msra.mxu0 %vm1429_vm15, %v1241_v24 }
  0x6b   :  { %1091 = vmatprep.subr.bf16.mxu1 %v1238_v1  ;;  %1163 = vmatprep.subr.bf16.mxu0 %v1238_v1 }
  0x6e   :  { %1093 = vmatpush3.bf16.msra.mxu1 %v1092_v31  ;;  %1165 = vmatpush3.bf16.msk.msra.mxu0 %vm1478_vm3, %v1241_v24 }
  0x6f   :  { %1094 = vmatprep.subr.bf16.mxu1 %v1238_v1  ;;  %1166 = vmatprep.subr.bf16.mxu0 %v1238_v1 }
  0x72   :  { %1096 = vmatpush3.bf16.msra.mxu1 %v1095_v41  ;;  %1168 = vmatpush3.bf16.msk.msra.mxu0 %vm1521_vm8, %v1241_v24 }
  0x73   :  { %1097 = vmatprep.subr.bf16.mxu1 %v1238_v1  ;;  %1169 = vmatprep.subr.bf16.mxu0 %v1238_v1  ;;  %v715_v1 = vld [vmem:[%s1730_s1] ss:$0 sm:$0xff] }
  0x76   :  { %1099 = vmatpush3.bf16.msra.mxu1 %v1098_v42  ;;  %1171 = vmatpush3.bf16.msk.msra.mxu0 %vm1562_vm13, %v1241_v24 }
  0x79   :  { %921 = vmatmul.mubr.f32.vlgmr.msra.gmra.mrb[0].mxu1 %v1511_v20  ;;  %1026 = vmatmul.mubr.f32.vlgmr.msra.gmra.mrb[0].mxu0 %v1492_v13 }
 0x14c   :  { %v388_v49 = vpop.f32.mrb[0].mxu1  ;;  %v635_v53 = vpop.f32.mrb[0].mxu0 }
 0x14d   :  { %v1172_v62 = vadd.f32 %v635_v53, %v388_v49  ;;  %v922_v63 = vpop.f32.mrb[1].mxu1  ;;  %v1027_v8 = vpop.f32.mrb[1].mxu0 }
 0x14f   :  { %v639_v15 = vmul.f32 0.03125, %v1172_v62 }
 0x151   :  { %v640_v19 = vadd.f32 1e-06, %v639_v15 }
 0x153   :  { %1187 = vrsqrt.f32 %v640_v19 }
 0x15d   :  { %v1188_v23 = vpop.eup %1187 }
 0x15e   :  { %v643_v24 = vmul.f32 %v1188_v23, %v1434_v56 }
 0x160   :  { %v650_v20 = vmul.f32 %v715_v1, %v643_v24 }
 0x162   :  { %651 = vst [vmem:[#allocation5] sm:$0xf] %v650_v20 }
 0x163   :  { %1222 = shalt.err (!%p1219_p12)
}
 0x164   :  { %s1223_s27 = scalar_lea.hbm %s1731_s2, 64 }
 0x165   :  { %p1224_p13 = scmp.ne.s32.totalorder %s1731_s2, %s1223_s27  ;;  %p1227_p0 = scmp.lt.u32.totalorder %s1223_s27, %s1731_s2 }
 0x167   :  { %p1229_p1 = pnand %p1227_p0, %p1224_p13 }
 0x169   :  { %1232 = shalt.err (!%p1229_p1)
}
 0x16a   :  { %661 = dma.vmem_to_hbm [thread:$0]  %s659_s23, 64, %s1731_s2, [#allocation4]  }
 0x16b   :  { %1235 = dma.done.wait [#allocation4], 64  }
 0x16c   :  { %1236 = vsyncadd [#allocation4], 4294967232 }
 0x16d   :  { %665 = vsyncpa [#allocation3], 1 }
 0x16e   :  { %666 = vsyncpa [#allocation4], 1 }

</bundles_post_ra>
